<compile_context>
chip_gen: v7x
topology: tpu7x:2x2x1
jax: 0.10.0
libtpu: 0.0.40
codegen_flags: <defaults>
</compile_context>

<pallas_src>
import functools

import jax
import jax.numpy as jnp
from jax import lax
from jax.experimental import pallas as pl
from jax.experimental.pallas import tpu as pltpu

_EPS = 1e-5  # torch BatchNorm1d / InstanceNorm1d default
_MAX_ROW_TILE = 512  # rows per tile for the batch-norm grid (mem-bound sweet spot)


def _round_up(x, m):
    return (x + m - 1) // m * m


# ----------------------------------------------------------------------------
# BatchNorm1d path: two-phase row-tiled grid.
#   grid = (2, n_tiles); phase 0 accumulates stats, phase 1 normalizes.
# ----------------------------------------------------------------------------
def _batchnorm_kernel(x_ref, gamma_ref, beta_ref, o_ref,
                      sum_ref, sumsq_ref, *, eps, inv_n):
    phase = pl.program_id(0)
    tile = pl.program_id(1)

    @pl.when((phase == 0) & (tile == 0))
    def _zero_stats():
        sum_ref[...] = jnp.zeros_like(sum_ref)
        sumsq_ref[...] = jnp.zeros_like(sumsq_ref)

    @pl.when(phase == 0)
    def _accumulate():
        x = x_ref[...].astype(jnp.float32)                       # (TM, E)
        sum_ref[...] += jnp.sum(x, axis=0, keepdims=True)        # (1, E)
        sumsq_ref[...] += jnp.sum(x * x, axis=0, keepdims=True)  # (1, E)

    @pl.when(phase == 1)
    def _normalize():
        x = x_ref[...].astype(jnp.float32)                       # (TM, E)
        mean = sum_ref[...] * inv_n                              # (1, E)
        var = jnp.maximum(sumsq_ref[...] * inv_n - mean * mean, 0.0)
        scale = gamma_ref[...] * lax.rsqrt(var + eps)            # (1, E), EUP
        shift = beta_ref[...] - mean * scale                     # (1, E)
        o_ref[...] = (x * scale + shift).astype(o_ref.dtype)


def batch_norm(x, gamma, beta, *, eps=_EPS):
    """BatchNorm1d(E) on x.reshape(-1, E), reshaped back (training-mode stats)."""
    orig_shape = x.shape
    E = orig_shape[-1]
    x2 = x.reshape(-1, E)
    N = x2.shape[0]

    # Row tile: big enough to hit the HBM roofline, sublane (8) aligned.
    tm = min(_MAX_ROW_TILE, _round_up(N, 8))
    n_pad = _round_up(N, tm)
    if n_pad != N:
        # Zero rows contribute nothing to sum / sumsq; stats use the real N.
        x2 = jnp.pad(x2, ((0, n_pad - N), (0, 0)))
    n_tiles = n_pad // tm

    kernel = functools.partial(_batchnorm_kernel, eps=eps, inv_n=1.0 / N)
    out = pl.pallas_call(
        kernel,
        out_shape=jax.ShapeDtypeStruct((n_pad, E), x.dtype),
        grid=(2, n_tiles),  # (phase, row tile)
        in_specs=[
            pl.BlockSpec((tm, E), lambda p, j: (j, 0)),
            pl.BlockSpec((1, E), lambda p, j: (0, 0)),
            pl.BlockSpec((1, E), lambda p, j: (0, 0)),
        ],
        # Phase 0 never writes: keep the output block index pinned to 0 so the
        # stats phase does not double the output writeback traffic.
        out_specs=pl.BlockSpec((tm, E), lambda p, j: (p * j, 0)),
        scratch_shapes=[
            pltpu.VMEM((1, E), jnp.float32),   # running sum
            pltpu.VMEM((1, E), jnp.float32),   # running sum of squares
        ],
        compiler_params=pltpu.CompilerParams(
            # Stats in phase 0 depend on every row tile -> both axes sequential.
            dimension_semantics=("arbitrary", "arbitrary")),
    )(x2, gamma.reshape(1, E), beta.reshape(1, E))

    if n_pad != N:
        out = out[:N]
    return out.reshape(orig_shape)


# ----------------------------------------------------------------------------
# InstanceNorm1d path: normalize over the sequence axis per (sample, channel).
# Grid over B; each batch element is independent -> "parallel".
# ----------------------------------------------------------------------------
def _instancenorm_kernel(x_ref, gamma_ref, beta_ref, o_ref, *, eps, inv_s):
    x = x_ref[...].astype(jnp.float32)                       # (1, S, E)
    mean = jnp.sum(x, axis=1, keepdims=True) * inv_s         # (1, 1, E)
    msq = jnp.sum(x * x, axis=1, keepdims=True) * inv_s      # (1, 1, E)
    var = jnp.maximum(msq - mean * mean, 0.0)
    scale = gamma_ref[...] * lax.rsqrt(var + eps)            # (1, 1, E)
    shift = beta_ref[...] - mean * scale
    o_ref[...] = (x * scale + shift).astype(o_ref.dtype)


def instance_norm(x, gamma, beta, *, eps=_EPS):
    """x: (B, S, E) -> (B, S, E)."""
    B, S, E = x.shape
    kernel = functools.partial(_instancenorm_kernel, eps=eps, inv_s=1.0 / S)
    return pl.pallas_call(
        kernel,
        out_shape=jax.ShapeDtypeStruct((B, S, E), x.dtype),
        grid=(B,),
        in_specs=[
            pl.BlockSpec((1, S, E), lambda b: (b, 0, 0)),
            pl.BlockSpec((1, 1, E), lambda b: (0, 0, 0)),
            pl.BlockSpec((1, 1, E), lambda b: (0, 0, 0)),
        ],
        out_specs=pl.BlockSpec((1, S, E), lambda b: (b, 0, 0)),
        compiler_params=pltpu.CompilerParams(
            dimension_semantics=("parallel",)),  # shards across TCs on v7x
    )(x, gamma.reshape(1, 1, E), beta.reshape(1, 1, E))


# ----------------------------------------------------------------------------
# Module-level forward
# ----------------------------------------------------------------------------
def normalization_forward(x, params, normalization="batch"):
    if normalization == "batch":
        return batch_norm(x, params["gamma"], params["beta"])
    elif normalization == "instance":
        return instance_norm(x, params["gamma"], params["beta"])
    else:
        return x  # unknown normalizer -> identity (matches the torch fall-through)


# Pure-JAX references for verification.
def _ref_batch(x, gamma, beta, eps=_EPS):
    orig = x.shape
    x2 = x.reshape(-1, orig[-1]).astype(jnp.float32)
    mean = jnp.mean(x2, axis=0, keepdims=True)
    var = jnp.var(x2, axis=0, keepdims=True)  # biased (ddof=0), like torch norm
    y = (x2 - mean) / jnp.sqrt(var + eps) * gamma[None, :] + beta[None, :]
    return y.reshape(orig).astype(x.dtype)


def _ref_instance(x, gamma, beta, eps=_EPS):
    xf = x.astype(jnp.float32)
    mean = jnp.mean(xf, axis=1, keepdims=True)
    var = jnp.var(xf, axis=1, keepdims=True)
    y = (xf - mean) / jnp.sqrt(var + eps) * gamma[None, None, :] + beta[None, None, :]
    return y.astype(x.dtype)


def _check(x, params):
    out_b = jax.block_until_ready(normalization_forward(x, params, "batch"))
    out_i = jax.block_until_ready(normalization_forward(x, params, "instance"))
    ref_b = _ref_batch(x, params["gamma"], params["beta"])
    ref_i = _ref_instance(x, params["gamma"], params["beta"])
    assert out_b.shape == x.shape and out_i.shape == x.shape
    assert jnp.allclose(out_b, ref_b, atol=1e-4, rtol=1e-4), "batch-norm mismatch"
    assert jnp.allclose(out_i, ref_i, atol=1e-4, rtol=1e-4), "instance-norm mismatch"


if __name__ == "__main__":
    key = jax.random.PRNGKey(0)
    kx, kg, kb, kx2, kx3 = jax.random.split(key, 5)

    E = 128  # lane-dense feature axis
    stdv = 1.0 / (E ** 0.5)  # init_parameters(): uniform(-stdv, stdv)
    params = {
        "gamma": jax.random.uniform(kg, (E,), jnp.float32, -stdv, stdv),
        "beta": jax.random.uniform(kb, (E,), jnp.float32, -stdv, stdv),
    }

    # 1) Small demo shape: batch=2, seq=16, embed_dim=128 (single-tile grid).
    _check(jax.random.normal(kx, (2, 16, E), dtype=jnp.float32), params)

    # 2) Multi-tile path: N = 8*128 = 1024 rows -> two 512-row tiles.
    _check(jax.random.normal(kx2, (8, 128, E), dtype=jnp.float32), params)

    # 3) Non-divisible row count -> exercises the zero-padding path.
    _check(jax.random.normal(kx3, (3, 20, E), dtype=jnp.float32), params)

    print("KERNEL_OK")
</pallas_src>

<mosaic_0001>
module attributes {stable_mosaic.version = 11 : i64} {
  func.func @_batchnorm_kernel(%arg0: i32, %arg1: i32, %arg2: memref<32x128xf32, #tpu.memory_space<vmem>>, %arg3: memref<1x128xf32, #tpu.memory_space<vmem>>, %arg4: memref<1x128xf32, #tpu.memory_space<vmem>>, %arg5: memref<32x128xf32, #tpu.memory_space<vmem>>, %arg6: memref<1x128xf32, #tpu.memory_space<vmem>>, %arg7: memref<1x128xf32, #tpu.memory_space<vmem>>) attributes {dimension_semantics = [#tpu.dimension_semantics<arbitrary>, #tpu.dimension_semantics<arbitrary>], iteration_bounds = array<i64: 2, 1>, scalar_prefetch = 0 : i64, scratch_operands = 2 : i64, tpu.core_type = #tpu.core_type<tc>, window_params = [{transform_indices = @transform_0, window_bounds = array<i64: 32, 128>}, {pipeline_mode = #tpu.pipeline_mode<synchronous>, transform_indices = @transform_1, window_bounds = array<i64: 1, 128>}, {pipeline_mode = #tpu.pipeline_mode<synchronous>, transform_indices = @transform_2, window_bounds = array<i64: 1, 128>}, {transform_indices = @transform_3, window_bounds = array<i64: 32, 128>}]} {
    %c0_i32 = arith.constant 0 : i32
    %0 = arith.cmpi eq, %arg0, %c0_i32 : i32
    %c0_i32_0 = arith.constant 0 : i32
    %1 = arith.cmpi eq, %arg1, %c0_i32_0 : i32
    %2 = arith.andi %0, %1 : i1
    %3 = arith.extui %2 : i1 to i32
    %c0_i32_1 = arith.constant 0 : i32
    %4 = arith.cmpi ne, %3, %c0_i32_1 : i32
    scf.if %4 {
      %cst = arith.constant 0.000000e+00 : f32
      %11 = vector.broadcast %cst : f32 to vector<1x128xf32>
      %c0 = arith.constant 0 : index
      %c0_5 = arith.constant 0 : index
      %12 = vector.load %arg6[%c0, %c0_5] : memref<1x128xf32, #tpu.memory_space<vmem>>, vector<1x128xf32>
      tpu.vector_store %arg6[%c0, %c0_5], %11 {strides = array<i32>} : memref<1x128xf32, #tpu.memory_space<vmem>>, vector<1x128xf32>,
      %cst_6 = arith.constant 0.000000e+00 : f32
      %13 = vector.broadcast %cst_6 : f32 to vector<1x128xf32>
      %c0_7 = arith.constant 0 : index
      %c0_8 = arith.constant 0 : index
      %14 = vector.load %arg7[%c0_7, %c0_8] : memref<1x128xf32, #tpu.memory_space<vmem>>, vector<1x128xf32>
      tpu.vector_store %arg7[%c0_7, %c0_8], %13 {strides = array<i32>} : memref<1x128xf32, #tpu.memory_space<vmem>>, vector<1x128xf32>,
    } else {
    }
    %c0_i32_2 = arith.constant 0 : i32
    %5 = arith.cmpi eq, %arg0, %c0_i32_2 : i32
    %6 = arith.extui %5 : i1 to i32
    %c0_i32_3 = arith.constant 0 : i32
    %7 = arith.cmpi ne, %6, %c0_i32_3 : i32
    scf.if %7 {
      %c0 = arith.constant 0 : index
      %c0_5 = arith.constant 0 : index
      %11 = vector.load %arg2[%c0, %c0_5] : memref<32x128xf32, #tpu.memory_space<vmem>>, vector<32x128xf32>
      %c0_6 = arith.constant 0 : index
      %c0_7 = arith.constant 0 : index
      %12 = vector.load %arg6[%c0_6, %c0_7] : memref<1x128xf32, #tpu.memory_space<vmem>>, vector<1x128xf32>
      %cst = arith.constant dense<0.000000e+00> : vector<128xf32>
      %13 = vector.multi_reduction <add>, %11, %cst [0] : vector<32x128xf32> to vector<128xf32>
      %14 = vector.shape_cast %13 : vector<128xf32> to vector<1x128xf32>
      %15 = arith.addf %12, %14 : vector<1x128xf32>
      %c0_8 = arith.constant 0 : index
      %c0_9 = arith.constant 0 : index
      %16 = vector.load %arg6[%c0_8, %c0_9] : memref<1x128xf32, #tpu.memory_space<vmem>>, vector<1x128xf32>
      tpu.vector_store %arg6[%c0_8, %c0_9], %15 {strides = array<i32>} : memref<1x128xf32, #tpu.memory_space<vmem>>, vector<1x128xf32>,
      %c0_10 = arith.constant 0 : index
      %c0_11 = arith.constant 0 : index
      %17 = vector.load %arg7[%c0_10, %c0_11] : memref<1x128xf32, #tpu.memory_space<vmem>>, vector<1x128xf32>
      %18 = arith.mulf %11, %11 : vector<32x128xf32>
      %cst_12 = arith.constant dense<0.000000e+00> : vector<128xf32>
      %19 = vector.multi_reduction <add>, %18, %cst_12 [0] : vector<32x128xf32> to vector<128xf32>
      %20 = vector.shape_cast %19 : vector<128xf32> to vector<1x128xf32>
      %21 = arith.addf %17, %20 : vector<1x128xf32>
      %c0_13 = arith.constant 0 : index
      %c0_14 = arith.constant 0 : index
      %22 = vector.load %arg7[%c0_13, %c0_14] : memref<1x128xf32, #tpu.memory_space<vmem>>, vector<1x128xf32>
      tpu.vector_store %arg7[%c0_13, %c0_14], %21 {strides = array<i32>} : memref<1x128xf32, #tpu.memory_space<vmem>>, vector<1x128xf32>,
    } else {
    }
    %c1_i32 = arith.constant 1 : i32
    %8 = arith.cmpi eq, %arg0, %c1_i32 : i32
    %9 = arith.extui %8 : i1 to i32
    %c0_i32_4 = arith.constant 0 : i32
    %10 = arith.cmpi ne, %9, %c0_i32_4 : i32
    scf.if %10 {
      %c0 = arith.constant 0 : index
      %c0_5 = arith.constant 0 : index
      %11 = vector.load %arg2[%c0, %c0_5] : memref<32x128xf32, #tpu.memory_space<vmem>>, vector<32x128xf32>
      %c0_6 = arith.constant 0 : index
      %c0_7 = arith.constant 0 : index
      %12 = vector.load %arg6[%c0_6, %c0_7] : memref<1x128xf32, #tpu.memory_space<vmem>>, vector<1x128xf32>
      %cst = arith.constant 3.125000e-02 : f32
      %13 = vector.broadcast %cst : f32 to vector<1x128xf32>
      %14 = arith.mulf %12, %13 : vector<1x128xf32>
      %c0_8 = arith.constant 0 : index
      %c0_9 = arith.constant 0 : index
      %15 = vector.load %arg7[%c0_8, %c0_9] : memref<1x128xf32, #tpu.memory_space<vmem>>, vector<1x128xf32>
      %cst_10 = arith.constant 3.125000e-02 : f32
      %16 = vector.broadcast %cst_10 : f32 to vector<1x128xf32>
      %17 = arith.mulf %15, %16 : vector<1x128xf32>
      %18 = arith.mulf %14, %14 : vector<1x128xf32>
      %19 = arith.subf %17, %18 : vector<1x128xf32>
      %cst_11 = arith.constant 0.000000e+00 : f32
      %20 = vector.broadcast %cst_11 : f32 to vector<1x128xf32>
      %21 = arith.maximumf %19, %20 : vector<1x128xf32>
      %c0_12 = arith.constant 0 : index
      %c0_13 = arith.constant 0 : index
      %22 = vector.load %arg3[%c0_12, %c0_13] : memref<1x128xf32, #tpu.memory_space<vmem>>, vector<1x128xf32>
      %cst_14 = arith.constant 9.99999974E-6 : f32
      %23 = vector.broadcast %cst_14 : f32 to vector<1x128xf32>
      %24 = arith.addf %21, %23 : vector<1x128xf32>
      %25 = math.rsqrt %24 : vector<1x128xf32>
      %26 = arith.mulf %22, %25 : vector<1x128xf32>
      %c0_15 = arith.constant 0 : index
      %c0_16 = arith.constant 0 : index
      %27 = vector.load %arg4[%c0_15, %c0_16] : memref<1x128xf32, #tpu.memory_space<vmem>>, vector<1x128xf32>
      %28 = arith.mulf %14, %26 : vector<1x128xf32>
      %29 = arith.subf %27, %28 : vector<1x128xf32>
      %30 = vector.broadcast %26 : vector<1x128xf32> to vector<32x128xf32>
      %31 = arith.mulf %11, %30 : vector<32x128xf32>
      %32 = vector.broadcast %29 : vector<1x128xf32> to vector<32x128xf32>
      %33 = arith.addf %31, %32 : vector<32x128xf32>
      %c0_17 = arith.constant 0 : index
      %c0_18 = arith.constant 0 : index
      %34 = vector.load %arg5[%c0_17, %c0_18] : memref<32x128xf32, #tpu.memory_space<vmem>>, vector<32x128xf32>
      tpu.vector_store %arg5[%c0_17, %c0_18], %33 {strides = array<i32>} : memref<32x128xf32, #tpu.memory_space<vmem>>, vector<32x128xf32>,
    } else {
    }
    return
  }
  func.func @transform_0(%arg0: i32, %arg1: i32) -> (i32, i32) {
    %c0_i32 = arith.constant 0 : i32
    %c0_i32_0 = arith.constant 0 : i32
    return %arg1, %c0_i32 : i32, i32
  }
  func.func @transform_1(%arg0: i32, %arg1: i32) -> (i32, i32) {
    %c0_i32 = arith.constant 0 : i32
    %c0_i32_0 = arith.constant 0 : i32
    %c0_i32_1 = arith.constant 0 : i32
    return %c0_i32, %c0_i32_0 : i32, i32
  }
  func.func @transform_2(%arg0: i32, %arg1: i32) -> (i32, i32) {
    %c0_i32 = arith.constant 0 : i32
    %c0_i32_0 = arith.constant 0 : i32
    %c0_i32_1 = arith.constant 0 : i32
    return %c0_i32, %c0_i32_0 : i32, i32
  }
  func.func @transform_3(%arg0: i32, %arg1: i32) -> (i32, i32) {
    %0 = arith.muli %arg0, %arg1 : i32
    %c0_i32 = arith.constant 0 : i32
    %c0_i32_0 = arith.constant 0 : i32
    return %0, %c0_i32 : i32, i32
  }
}

</mosaic_0001>

<bundles_post_ra>
// kernel: tpu_custom_call.1
= control target key start
LH: loop header
LB: loop body
LE: loop exit
PB: predicated region body
PF: predicated region fallthrough
CT: control target
= control target key end

     0   :  { %8 = vsyncpa [#allocation5], 0  ;;  %s653_s0 = inlined_call_operand.hbm [shape: f32[32,128], index: 0, kind: input, shape index: {}]   ;;  %s654_s1 = inlined_call_operand.vmem [shape: f32[1,128], index: 1, kind: input, shape index: {}]   ;;  %s655_s2 = inlined_call_operand.vmem [shape: f32[1,128], index: 2, kind: input, shape index: {}]   ;;  %s656_s3 = inlined_call_operand.hbm [shape: f32[32,128], index: 3, kind: output, shape index: {}]  }
   0x1   :  { %9 = vsyncpa [#allocation6], 0 }
   0x2   :  { %11 = vsyncpa [#allocation6 + $0x1], 0  ;;  %s546_s12 = smov 0   ;;  %s548_s13 = smov 0  }
   0x3   :  { %s550_s14 = smov 0  }
   0x4 LB: > { %s365_s15 = sadd.s32 4294967295, %s517_s14   ;;  %s366_s16 = sadd.s32 4294967294, %s517_s14   ;;  %s517_s14 = sphi %s550_s14, %s17_s14   ;;  %s513_s13 = sphi %s548_s13, %s667_s13   ;;  %s509_s12 = sphi %s546_s12, %s666_s12  }
   0x5   : > { %s29_s17 = sadd.s32 1, %s513_s13  ;;  %p367_p0 = scmp.ge.s32.totalorder %s517_s14, 1 }
   0x6   : > { %p31_p1 = scmp.ge.s32.totalorder %s29_s17, 2  ;;  %p130_p2 = scmp.lt.s32.totalorder %s517_s14, 3 }
   0x7   : > { %p568_p3 = scmp.eq.s32.totalorder %s365_s15, 0  ;;  %s519_s20 = smov [#allocation4]  }
   0x8   : > { %s669_s17 = smov (%p31_p1, %s29_s17), 0  ;;  %p574_p4 = pnand %p367_p0, %p130_p2 }
   0x9   : > { %s660_s18 = scalar_select %p568_p3, 1, 0 }
   0xa   : > { %s661_s19 = scalar_select %p574_p4, 1, 0 }
   0xb   : > { %s145_s21 = sshll.u32 %s519_s20, 4  ;;  %p387_p5 = pneg %p574_p4  ;;  %s146_s21 = int_to_ptr.vmem [resolvable:$true] %s145_s21 }
   0xc   : > { %s433_s25 = scalar_lea.hbm %s653_s0, 512 }
   0xd   : > { %p582_p6 = pnand %p568_p3, %p387_p5  ;;  %p434_p7 = scmp.ne.s32.totalorder %s653_s0, %s433_s25 }
   0xe   : > { %p440_p11 = scmp.lt.u32.totalorder %s433_s25, %s653_s0 }
   0xf   : > { %p435_p8 = pneg %p582_p6 }
  0x11   : > { %p436_p9 = pnand %p435_p8, %p434_p7 }
  0x13   : > { %p437_p10 = pneg %p436_p9 }
  0x15   : > { %p442_p12 = pnand %p440_p11, %p437_p10 }
  0x17   : > { %445 = shalt.err (!%p442_p12)
}
  0x18   : > { %s446_s30 = scalar_lea.vmem %s146_s21, 512  ;;  %p454_p2 = scmp.lt.s32.totalorder %s146_s21, %s146_s21 }
  0x19   : > { %p447_p13 = scmp.ne.s32.totalorder %s146_s21, %s446_s30  ;;  %p455_p5 = scmp.lt.s32.totalorder %s446_s30, %s446_s30 }
  0x1b   : > { %p449_p0 = pnand %p447_p13, %p435_p8  ;;  %p456_p3 = por %p455_p5, %p454_p2 }
  0x1d   : > { %p450_p1 = pneg %p449_p0 }
  0x1f   : > { %p457_p4 = pnand %p456_p3, %p450_p1 }
  0x21   : > { %460 = shalt.err (!%p457_p4)
}
  0x22   : > { %s520_s4 = smov 128   ;;  %s521_s5 = smov 8  }
  0x23   : > { %390 = dma.hbm_to_vmem [thread:$0]  (!%p582_p6), %s653_s0, 512, %s146_s21, [#allocation5], %s520_s4, %s520_s4, %s521_s5  }
  0x24   : > { %p663_p7 = scmp.ne.s32.totalorder %s661_s19, 0 }
  0x25   : > { %p664_p9 = scmp.ne.s32.totalorder (!%p663_p7), %s660_s18, 0 }
  0x26   : > { %167 = sbr.rel (%p663_p7) target bundleno = 142 (0x8e), region = 32 }
  0x2d   : > { %500 = dma.done.wait (%p664_p9), [#allocation5], 512  }
  0x2e   : > { %502 = vsyncadd (%p664_p9), [#allocation5], 4294966784  ;;  %p189_p3 = scmp.eq.s32.totalorder %s509_s12, 0 }
  0x2f   : > { %v522_v0 = vmov (%p189_p3), 0.0  }
  0x30   : > { %194 = sbr.rel (!%p189_p3) target bundleno = 55 (0x37), region = 40  ;;  %195 = vst [vmem:[#allocation2] sm:$0x1] (%p189_p3), %v522_v0  ;;  %196 = vst [vmem:[#allocation3] sm:$0x1] (%p189_p3), %v522_v0 }
  0x37 PF: > { %p372_p4 = scmp.ne.s32.totalorder %s509_s12, 0 }
  0x38   : > { %v200_v1 = vld [vmem:[#allocation4] sm:$0xff] (!%p372_p4)  ;;  %v201_v2 = vld [vmem:[#allocation4 + $0x8] sm:$0xff] (!%p372_p4)  ;;  %v202_v3 = vld [vmem:[#allocation4 + $0x10] sm:$0xff] (!%p372_p4) }
  0x39   : > { %199 = sbr.rel (%p372_p4) target bundleno = 80 (0x50), region = 44  ;;  %v203_v4 = vld [vmem:[#allocation4 + $0x18] sm:$0xff] (!%p372_p4)  ;;  %v205_v5 = vadd.f32 (!%p372_p4), %v201_v2, %v200_v1  ;;  %v217_v6 = vmul.f32 (!%p372_p4), %v200_v1, %v200_v1  ;;  %v218_v7 = vmul.f32 (!%p372_p4), %v201_v2, %v201_v2  ;;  %v219_v8 = vmul.f32 (!%p372_p4), %v202_v3, %v202_v3 }
  0x3a   : > { %v220_v10 = vmul.f32 (!%p372_p4), %v203_v4, %v203_v4  ;;  %v204_v24 = vld [vmem:[#allocation2] sm:$0x1] (!%p372_p4)  ;;  %v216_v27 = vld [vmem:[#allocation3] sm:$0x1] (!%p372_p4) }
  0x3b   : > { %v206_v9 = vadd.f32 (!%p372_p4), %v205_v5, %v202_v3  ;;  %v221_v11 = vadd.f32 (!%p372_p4), %v218_v7, %v217_v6 }
  0x3d   : > { %v207_v12 = vadd.f32 (!%p372_p4), %v206_v9, %v203_v4  ;;  %v222_v13 = vadd.f32 (!%p372_p4), %v221_v11, %v219_v8 }
  0x3f   : > { %v208_v14 = vrot.slane (!%p372_p4), %v207_v12, 4  ;;  %v223_v15 = vadd.f32 (!%p372_p4), %v222_v13, %v220_v10 }
  0x41   : > { %v209_v16 = vadd.f32 %v208_v14, %v207_v12  ;;  %v224_v17 = vrot.slane %v223_v15, 4 }
  0x43   : > { %v210_v18 = vrot.slane %v209_v16, 2  ;;  %v225_v19 = vadd.f32 %v224_v17, %v223_v15 }
  0x45   : > { %v211_v20 = vadd.f32 %v210_v18, %v209_v16  ;;  %v226_v21 = vrot.slane %v225_v19, 2 }
  0x47   : > { %v212_v22 = vrot.slane %v211_v20, 1  ;;  %v227_v23 = vadd.f32 %v226_v21, %v225_v19 }
  0x49   : > { %v213_v25 = vadd.f32 %v212_v22, %v211_v20  ;;  %v228_v26 = vrot.slane %v227_v23, 1 }
  0x4b   : > { %v214_v28 = vadd.f32 %v213_v25, %v204_v24  ;;  %v229_v29 = vadd.f32 %v228_v26, %v227_v23 }
  0x4d   : > { %215 = vst [vmem:[#allocation2] sm:$0x1] %v214_v28  ;;  %v230_v30 = vadd.f32 %v229_v29, %v216_v27 }
  0x4f   : > { %231 = vst [vmem:[#allocation3] sm:$0x1] %v230_v30 }
  0x50 PF: > { %p373_p6 = scmp.ne.s32.totalorder %s509_s12, 1 }
  0x51   : > { %v255_v39 = vlaneseq (!%p373_p6)  ;;  %v247_v41 = vld [vmem:[%s654_s1] sm:$0x1] (!%p373_p6)  ;;  %v236_v44 = vld [vmem:[#allocation4] sm:$0xff] (!%p373_p6)  ;;  %v237_v47 = vld [vmem:[#allocation4 + $0x8] sm:$0xff] (!%p373_p6) }
  0x52   : > { %235 = sbr.rel (%p373_p6) target bundleno = 118 (0x76), region = 48  ;;  %v251_v46 = vld [vmem:[%s655_s2] sm:$0x1] (!%p373_p6)  ;;  %v238_v48 = vld [vmem:[#allocation4 + $0x10] sm:$0xff] (!%p373_p6) }
  0x53   : > { %v256_v40 = vshrl.u32 (!%p373_p6), %v255_v39, 7  ;;  %v239_v51 = vld [vmem:[#allocation4 + $0x18] sm:$0xff] (!%p373_p6) }
  0x54   : > { %v240_v31 = vld [vmem:[#allocation2] sm:$0x1] (!%p373_p6) }
  0x55   : > { %v241_v33 = vmul.f32 (!%p373_p6), 0.03125, %v240_v31  ;;  %v257_v42 = vsub.s32 (!%p373_p6), 0, %v256_v40 }
  0x56   : > { %v242_v32 = vld [vmem:[#allocation3] sm:$0x1] (!%p373_p6) }
  0x57   : > { %v243_v34 = vmul.f32 (!%p373_p6), 0.03125, %v242_v32  ;;  %v244_v35 = vmul.f32 (!%p373_p6), %v241_v33, %v241_v33 }
  0x59   : > { %v245_v36 = vsub.f32 %v243_v34, %v244_v35 }
  0x5b   : > { %v246_v37 = vmax.f32 %v245_v36, 0.0 }
  0x5d   : > { %v248_v38 = vadd.f32 1e-05, %v246_v37 }
  0x5f   : > { %431 = vrsqrt.f32 %v248_v38 }
  0x69   : > { %v432_v43 = vpop.eup %431 }
  0x6a   : > { %v250_v45 = vmul.f32 %v432_v43, %v247_v41 }
  0x6c   : > { %v252_v49 = vmul.f32 %v250_v45, %v241_v33  ;;  %v258_v50 = vrot.slane %v250_v45, %v257_v42 }
  0x6e   : > { %v253_v52 = vsub.f32 %v251_v46, %v252_v49  ;;  %v260_v53 = vmul.f32 %v258_v50, %v236_v44  ;;  %v261_v54 = vmul.f32 %v258_v50, %v237_v47  ;;  %v262_v55 = vmul.f32 %v258_v50, %v238_v48 }
  0x6f   : > { %v263_v56 = vmul.f32 %v258_v50, %v239_v51 }
  0x70   : > { %v268_v57 = vrot.slane %v253_v52, %v257_v42 }
  0x72   : > { %v270_v58 = vadd.f32 %v268_v57, %v260_v53  ;;  %v271_v59 = vadd.f32 %v268_v57, %v261_v54  ;;  %v272_v60 = vadd.f32 %v268_v57, %v262_v55  ;;  %v273_v61 = vadd.f32 %v268_v57, %v263_v56 }
  0x74   : > { %274 = vst [vmem:[#allocation7] sm:$0xff] %v270_v58  ;;  %275 = vst [vmem:[#allocation7 + $0x8] sm:$0xff] %v271_v59 }
  0x75   : > { %276 = vst [vmem:[#allocation7 + $0x10] sm:$0xff] %v272_v60  ;;  %277 = vst [vmem:[#allocation7 + $0x18] sm:$0xff] %v273_v61 }
  0x76 PF: > { %p619_p8 = scmp.eq.s32.totalorder %s365_s15, 1  ;;  %s523_s18 = smov [#allocation7]  }
  0x77   : > { %s293_s19 = sshll.u32 %s523_s18, 4  ;;  %s294_s19 = int_to_ptr.vmem [resolvable:$true] %s293_s19 }
  0x78   : > { %s461_s20 = scalar_lea.vmem %s294_s19, 512  ;;  %s467_s21 = scalar_lea.vmem %s294_s19, 1024 }
  0x79   : > { %p462_p10 = scmp.ne.s32.totalorder %s294_s19, %s461_s20  ;;  %p468_p13 = scmp.lt.s32.totalorder %s294_s19, %s294_s19 }
  0x7a   : > { %p469_p0 = scmp.lt.s32.totalorder %s467_s21, %s461_s20 }
  0x7b   : > { %p463_p11 = pnand %p462_p10, %p619_p8 }
  0x7c   : > { %p470_p1 = por %p469_p0, %p468_p13 }
  0x7d   : > { %p464_p12 = pneg %p463_p11 }
  0x7f   : > { %p471_p2 = pnand %p470_p1, %p464_p12 }
  0x81   : > { %474 = shalt.err (!%p471_p2)
}
  0x82   : > { %s475_s23 = scalar_lea.hbm %s656_s3, 512 }
  0x83   : > { %p476_p5 = scmp.ne.s32.totalorder %s656_s3, %s475_s23  ;;  %p481_p3 = scmp.lt.u32.totalorder %s475_s23, %s656_s3 }
  0x85   : > { %p477_p7 = pnand %p476_p5, %p619_p8 }
  0x87   : > { %p478_p9 = pneg %p477_p7 }
  0x89   : > { %p483_p4 = pnand %p481_p3, %p478_p9 }
  0x8b   : > { %486 = shalt.err (!%p483_p4)
}
  0x8c   : > { %s524_s28 = smov 128   ;;  %s525_s29 = smov 8  }
  0x8d   : > { %384 = dma.vmem_to_hbm [thread:$0]  (%p619_p8), %s294_s19, 512, %s656_s3, [#allocation6], %s524_s28, %s524_s28, %s525_s29  }
  0x8e PF: > { %p398_p6 = scmp.ge.s32.totalorder %s517_s14, 2  ;;  %p399_p10 = scmp.eq.s32.totalorder %s366_s16, 1 }
  0x90   : > { %p392_p11 = pnand %p399_p10, %p398_p6 }
  0x92   : > { %504 = dma.done.wait (!%p392_p11), [#allocation6], 512  }
  0x93   : > { %506 = vsyncadd (!%p392_p11), [#allocation6], 4294966784  ;;  %s17_s14 = sadd.s32 1, %s517_s14   ;;  %s666_s12 = smov %s513_s13 }
  0x94   : > { %p14_p12 = scmp.ge.s32.totalorder %s17_s14, 4   ;;  %s667_s13 = smov %s669_s17 }
  0x96   :  { %16 = sbr.rel (!%p14_p12) target bundleno = 4 (0x4), region = 82 }
  0x9d   :  { %314 = vsyncpa [#allocation5], 1 }
  0x9e   :  { %316 = vsyncpa [#allocation5 + $0x1], 1 }
  0x9f   :  { %317 = vsyncpa [#allocation6], 1 }
  0xa0   :  { %319 = vsyncpa [#allocation6 + $0x1], 1 }

</bundles_post_ra>
